<compile_context>
chip_gen: v6e
topology: v6e:2x2x1
jax: 0.10.0
libtpu: 0.0.40
codegen_flags: <defaults>
</compile_context>

<pallas_src>
import jax
import jax.numpy as jnp
from jax.experimental import pallas as pl
from jax.experimental.pallas import tpu as pltpu

# ----------------------------- model dimensions ------------------------------
STATE_DIM = 32
ACTION_DIM = 8
NUM_AGENTS = 10
NUM_RESOURCES = 4
HIDDEN_DIMS = (512, 256, 128)

NUM_HEADS = 6
HEAD_HIDDEN = HIDDEN_DIMS[-1]                      # 128
FUSED_H1 = NUM_HEADS * HEAD_HIDDEN                 # 768
HEAD_OUT_DIMS = (ACTION_DIM,                       # action_policy_head     8
                 NUM_AGENTS * NUM_RESOURCES,       # resource_allocation   40
                 NUM_AGENTS,                       # load_balancing        10
                 NUM_RESOURCES,                    # scaling_decision       4
                 1,                                # cost_optimization      1
                 1)                                # value                  1

_offs, _o = [], 0
for _d in HEAD_OUT_DIMS:
    _offs.append(_o)
    _o += _d
HEAD_OFFSETS = tuple(_offs)                        # (0, 8, 48, 58, 62, 63)
TOTAL_HEAD_OUT = _o                                # 64
PACKED_OUT = 128                                   # lane-dense padded output

# bias slab layout (single f32 (1, 1792) array)
B1_OFF = 0
B2_OFF = B1_OFF + HIDDEN_DIMS[0]                   # 512
B3_OFF = B2_OFF + HIDDEN_DIMS[1]                   # 768
BH1_OFF = B3_OFF + HIDDEN_DIMS[2]                  # 896
BH2_OFF = BH1_OFF + FUSED_H1                       # 1664
BIAS_TOTAL = BH2_OFF + PACKED_OUT                  # 1792


# --------------------------------- kernel ------------------------------------
def _policy_kernel(state_ref, w1_ref, w2_ref, w3_ref, wh1_ref, wh2_ref,
                   bias_ref, out_ref):
    # Bias slab views (all lane-aligned static slices).
    b1 = bias_ref[:, B1_OFF:B1_OFF + HIDDEN_DIMS[0]]
    b2 = bias_ref[:, B2_OFF:B2_OFF + HIDDEN_DIMS[1]]
    b3 = bias_ref[:, B3_OFF:B3_OFF + HIDDEN_DIMS[2]]
    bh1 = bias_ref[:, BH1_OFF:BH1_OFF + FUSED_H1]
    bh2 = bias_ref[:, BH2_OFF:BH2_OFF + PACKED_OUT]

    def linear(x_bf16, w_ref, b_f32):
        # bf16 x bf16 on the MXU, f32 accumulation; bias add on the VPU in f32.
        return jnp.dot(x_bf16, w_ref[...],
                       preferred_element_type=jnp.float32) + b_f32

    def relu_bf16(y_f32):
        # Fused ReLU + storage cast: intermediate activations live in bf16
        # (halves vreg/VMEM traffic); all VPU math stays f32 (v5e: no bf16 VALU).
        return jnp.maximum(y_f32, 0.0).astype(jnp.bfloat16)

    # Feature trunk: Linear -> ReLU -> (Dropout == identity at inference), x3
    x = state_ref[...]                               # bf16 from the wrapper
    x = relu_bf16(linear(x, w1_ref, b1))
    x = relu_bf16(linear(x, w2_ref, b2))
    feat = relu_bf16(linear(x, w3_ref, b3))

    # All six head first layers fused: (TB, 128) @ (128, 768)
    hidden = relu_bf16(linear(feat, wh1_ref, bh1))
    # All six head second layers as one block-diagonal matmul:
    # (TB, 768) @ (768, 128); lanes >= 64 are exactly 0 (zero W cols + zero b).
    logits = linear(hidden, wh2_ref, bh2)            # f32

    lane = jax.lax.broadcasted_iota(jnp.int32, logits.shape, 1)

    def seg(h):
        lo = HEAD_OFFSETS[h]
        return (lane >= lo) & (lane < lo + HEAD_OUT_DIMS[h])

    is_action, is_res, is_load, is_scale, is_cost = (seg(0), seg(1), seg(2),
                                                     seg(3), seg(4))
    # value head (lane 63) and pad lanes (>=64) stay identity == logits.

    # ---- two segment softmaxes in a SINGLE exp pass --------------------------
    sm_mask = is_action | is_load
    m_act = jnp.max(jnp.where(is_action, logits, -1e30), -1, keepdims=True)
    m_load = jnp.max(jnp.where(is_load, logits, -1e30), -1, keepdims=True)
    m_lane = jnp.where(is_action, m_act, m_load)
    e = jnp.exp(jnp.where(sm_mask, logits - m_lane, 0.0))   # masked arg: no inf
    s_act = jnp.sum(jnp.where(is_action, e, 0.0), -1, keepdims=True)
    s_load = jnp.sum(jnp.where(is_load, e, 0.0), -1, keepdims=True)
    inv_act = pl.reciprocal(s_act, approx=True)              # EUP, ~free
    inv_load = pl.reciprocal(s_load, approx=True)
    sm = e * jnp.where(is_action, inv_act, inv_load)

    # ---- sigmoid (resource+cost) and tanh (scaling) in a SINGLE exp pass -----
    # tanh(x) = 2*sigmoid(2x) - 1
    sg_mask = is_res | is_cost | is_scale
    z = jnp.where(is_scale, 2.0 * logits, logits)
    z = jnp.where(sg_mask, z, 0.0)                            # masked arg
    sig = pl.reciprocal(1.0 + jnp.exp(-z), approx=True)
    sig = jnp.where(is_scale, 2.0 * sig - 1.0, sig)

    # Pad lanes / value head fall through to logits (pad lanes are exactly 0),
    # so no final lane<64 mask is needed.
    out_ref[...] = jnp.where(sm_mask, sm, jnp.where(sg_mask, sig, logits))


# ----------------------------- parameter handling -----------------------------
def init_raw_params(key):
    """Per-linear (W[in,out], b[1,out]) f32 params, PyTorch-Linear-like init."""
    dims = []
    prev = STATE_DIM
    for hd in HIDDEN_DIMS:
        dims.append((prev, hd))
        prev = hd
    for od in HEAD_OUT_DIMS:
        dims.append((prev, HEAD_HIDDEN))
        dims.append((HEAD_HIDDEN, od))

    keys = jax.random.split(key, len(dims))
    raw = []
    for k, (fi, fo) in zip(keys, dims):
        kw, kb = jax.random.split(k)
        s = 1.0 / float(fi) ** 0.5
        w = jax.random.uniform(kw, (fi, fo), jnp.float32, -s, s)
        b = jax.random.uniform(kb, (1, fo), jnp.float32, -s, s)
        raw.append((w, b))
    return raw


def pack_params(raw):
    """Pack raw per-layer params into the 6 kernel slabs (bf16 W, f32 bias)."""
    (w1, b1), (w2, b2), (w3, b3) = raw[0:3]
    heads = raw[3:]

    wh1 = jnp.concatenate([heads[2 * h][0] for h in range(NUM_HEADS)], axis=1)
    bh1 = jnp.concatenate([heads[2 * h][1] for h in range(NUM_HEADS)], axis=1)

    wh2 = jnp.zeros((FUSED_H1, PACKED_OUT), jnp.float32)
    bh2 = jnp.zeros((1, PACKED_OUT), jnp.float32)
    for h in range(NUM_HEADS):
        w2h, b2h = heads[2 * h + 1]
        lo = HEAD_OFFSETS[h]
        hi = lo + HEAD_OUT_DIMS[h]
        wh2 = wh2.at[h * HEAD_HIDDEN:(h + 1) * HEAD_HIDDEN, lo:hi].set(w2h)
        bh2 = bh2.at[:, lo:hi].set(b2h)

    bias = jnp.concatenate([b1, b2, b3, bh1, bh2], axis=1)   # (1, 1792) f32
    bf = lambda a: a.astype(jnp.bfloat16)
    return (bf(w1), bf(w2), bf(w3), bf(wh1), bf(wh2),
            bias.astype(jnp.float32))


# --------------------------------- wrapper ------------------------------------
def _round_up(x, m):
    return (x + m - 1) // m * m


def _choose_tile(batch):
    """Batch tile: <=1024 rows, and >=2 (even) grid steps when batch allows
    so the 'parallel' axis can shard across v7x's two TensorCores."""
    bp8 = _round_up(max(batch, 1), 8)
    if bp8 <= 8:
        return bp8
    n_tiles = max(2, -(-bp8 // 1024))
    if n_tiles % 2:
        n_tiles += 1
    return _round_up(-(-bp8 // n_tiles), 8)


def resource_policy_forward(state, packed_params):
    w1, w2, w3, wh1, wh2, bias = packed_params
    batch = state.shape[0]

    tb = _choose_tile(batch)
    bp = _round_up(batch, tb)
    state = state.astype(jnp.bfloat16)           # halve input DMA per tile
    if bp != batch:
        state = jnp.pad(state, ((0, bp - batch), (0, 0)))

    resident = lambda shp: pl.BlockSpec(shp, lambda i: (0, 0))   # weights

    packed = pl.pallas_call(
        _policy_kernel,
        out_shape=jax.ShapeDtypeStruct((bp, PACKED_OUT), jnp.float32),
        grid=(bp // tb,),
        in_specs=[
            pl.BlockSpec((tb, STATE_DIM), lambda i: (i, 0)),
            resident(w1.shape), resident(w2.shape), resident(w3.shape),
            resident(wh1.shape), resident(wh2.shape), resident(bias.shape),
        ],
        out_specs=pl.BlockSpec((tb, PACKED_OUT), lambda i: (i, 0)),
        compiler_params=pltpu.CompilerParams(
            dimension_semantics=("parallel",),     # megacore / 2-TC sharding
            vmem_limit_bytes=32 << 20),            # <= v7x-safe (64 MiB VMEM)
    )(state, w1, w2, w3, wh1, wh2, bias)

    packed = packed[:batch]

    def seg(h):
        lo = HEAD_OFFSETS[h]
        return packed[:, lo:lo + HEAD_OUT_DIMS[h]]

    action_probs = seg(0)
    resource_allocation = seg(1).reshape(batch, NUM_AGENTS, NUM_RESOURCES)
    load_balancing_weights = seg(2)
    scaling_decisions = seg(3)
    cost_constraint = seg(4)
    state_value = seg(5)
    return (action_probs, resource_allocation, load_balancing_weights,
            scaling_decisions, cost_constraint, state_value)


# ------------------------------ pure-JAX reference ----------------------------
def _reference_forward(state, raw_params):
    """Mirrors the kernel math (bf16 matmuls, f32 accumulation) for checking."""
    def lin(x, w, b):
        return (jnp.dot(x.astype(jnp.bfloat16), w.astype(jnp.bfloat16),
                        preferred_element_type=jnp.float32) + b)

    x = state.astype(jnp.float32)
    for (w, b) in raw_params[:3]:
        x = jnp.maximum(lin(x, w, b), 0.0)
    feat = x

    head_logits = []
    for h in range(NUM_HEADS):
        w1, b1 = raw_params[3 + 2 * h]
        w2, b2 = raw_params[3 + 2 * h + 1]
        hid = jnp.maximum(lin(feat, w1, b1), 0.0)
        head_logits.append(lin(hid, w2, b2))

    batch = state.shape[0]
    action = jax.nn.softmax(head_logits[0], axis=-1)
    resource = jax.nn.sigmoid(head_logits[1]).reshape(batch, NUM_AGENTS,
                                                      NUM_RESOURCES)
    load = jax.nn.softmax(head_logits[2], axis=-1)
    scale = jnp.tanh(head_logits[3])
    cost = jax.nn.sigmoid(head_logits[4])
    value = head_logits[5]
    return action, resource, load, scale, cost, value


# ----------------------------------- main -------------------------------------
if __name__ == "__main__":
    key = jax.random.PRNGKey(0)
    k_params, k_state = jax.random.split(key)

    raw_params = init_raw_params(k_params)
    packed_params = pack_params(raw_params)

    fwd = jax.jit(resource_policy_forward)
    names = ("action", "resource", "load", "scale", "cost", "value")

    # Check both the single-tile path (batch=2) and the multi-tile + padding
    # path (batch=12 -> grid of 2 tiles of 8 rows, 4 padded rows).
    for batch in (2, 12):
        k_state, sub = jax.random.split(k_state)
        state = jax.random.normal(sub, (batch, STATE_DIM), jnp.float32)

        outs = jax.block_until_ready(fwd(state, packed_params))
        refs = _reference_forward(state, raw_params)
        for name, o, r in zip(names, outs, refs):
            assert o.shape == r.shape, (batch, name, o.shape, r.shape)
            assert jnp.allclose(o, r, atol=5e-3, rtol=5e-3), \
                f"mismatch: batch={batch} head={name}"

    print("KERNEL_OK")
</pallas_src>

<mosaic_0001>
module attributes {stable_mosaic.version = 11 : i64} {
  func.func @_policy_kernel(%arg0: i32, %arg1: memref<8x32xbf16, #tpu.memory_space<vmem>>, %arg2: memref<32x512xbf16, #tpu.memory_space<vmem>>, %arg3: memref<512x256xbf16, #tpu.memory_space<vmem>>, %arg4: memref<256x128xbf16, #tpu.memory_space<vmem>>, %arg5: memref<128x768xbf16, #tpu.memory_space<vmem>>, %arg6: memref<768x128xbf16, #tpu.memory_space<vmem>>, %arg7: memref<1x1792xf32, #tpu.memory_space<vmem>>, %arg8: memref<8x128xf32, #tpu.memory_space<vmem>>) attributes {dimension_semantics = [#tpu.dimension_semantics<parallel>], iteration_bounds = array<i64: 1>, scalar_prefetch = 0 : i64, scratch_operands = 0 : i64, tpu.core_type = #tpu.core_type<tc>, window_params = [{transform_indices = @transform_0, window_bounds = array<i64: 8, 32>}, {pipeline_mode = #tpu.pipeline_mode<synchronous>, transform_indices = @transform_1, window_bounds = array<i64: 32, 512>}, {pipeline_mode = #tpu.pipeline_mode<synchronous>, transform_indices = @transform_2, window_bounds = array<i64: 512, 256>}, {pipeline_mode = #tpu.pipeline_mode<synchronous>, transform_indices = @transform_3, window_bounds = array<i64: 256, 128>}, {pipeline_mode = #tpu.pipeline_mode<synchronous>, transform_indices = @transform_4, window_bounds = array<i64: 128, 768>}, {pipeline_mode = #tpu.pipeline_mode<synchronous>, transform_indices = @transform_5, window_bounds = array<i64: 768, 128>}, {pipeline_mode = #tpu.pipeline_mode<synchronous>, transform_indices = @transform_6, window_bounds = array<i64: 1, 1792>}, {transform_indices = @transform_7, window_bounds = array<i64: 8, 128>}]} {
    %c0 = arith.constant 0 : index
    %c0_0 = arith.constant 0 : index
    %0 = vector.load %arg7[%c0, %c0_0] : memref<1x1792xf32, #tpu.memory_space<vmem>>, vector<1x512xf32>
    %c0_1 = arith.constant 0 : index
    %c512 = arith.constant 512 : index
    %1 = vector.load %arg7[%c0_1, %c512] : memref<1x1792xf32, #tpu.memory_space<vmem>>, vector<1x256xf32>
    %c0_2 = arith.constant 0 : index
    %c768 = arith.constant 768 : index
    %2 = vector.load %arg7[%c0_2, %c768] : memref<1x1792xf32, #tpu.memory_space<vmem>>, vector<1x128xf32>
    %c0_3 = arith.constant 0 : index
    %c896 = arith.constant 896 : index
    %3 = vector.load %arg7[%c0_3, %c896] : memref<1x1792xf32, #tpu.memory_space<vmem>>, vector<1x768xf32>
    %c0_4 = arith.constant 0 : index
    %c1664 = arith.constant 1664 : index
    %4 = vector.load %arg7[%c0_4, %c1664] : memref<1x1792xf32, #tpu.memory_space<vmem>>, vector<1x128xf32>
    %c0_5 = arith.constant 0 : index
    %c0_6 = arith.constant 0 : index
    %5 = vector.load %arg1[%c0_5, %c0_6] : memref<8x32xbf16, #tpu.memory_space<vmem>>, vector<8x32xbf16>
    %c0_7 = arith.constant 0 : index
    %c0_8 = arith.constant 0 : index
    %6 = vector.load %arg2[%c0_7, %c0_8] : memref<32x512xbf16, #tpu.memory_space<vmem>>, vector<32x512xbf16>
    %cst = arith.constant dense<0.000000e+00> : vector<8x512xf32>
    %7 = tpu.matmul %5, %6, %cst {dimension_numbers = #tpu.dot_dimension_numbers<[1], [0], [0], [1], [0, 0, 1, 1], [], []>} : vector<8x32xbf16>, vector<32x512xbf16>, vector<8x512xf32> -> vector<8x512xf32>
    %8 = vector.broadcast %0 : vector<1x512xf32> to vector<8x512xf32>
    %9 = arith.addf %7, %8 : vector<8x512xf32>
    %cst_9 = arith.constant 0.000000e+00 : f32
    %10 = vector.broadcast %cst_9 : f32 to vector<8x512xf32>
    %11 = arith.maximumf %9, %10 : vector<8x512xf32>
    %12 = arith.truncf %11 : vector<8x512xf32> to vector<8x512xbf16>
    %c0_10 = arith.constant 0 : index
    %c0_11 = arith.constant 0 : index
    %13 = vector.load %arg3[%c0_10, %c0_11] : memref<512x256xbf16, #tpu.memory_space<vmem>>, vector<512x256xbf16>
    %cst_12 = arith.constant dense<0.000000e+00> : vector<8x256xf32>
    %14 = tpu.matmul %12, %13, %cst_12 {dimension_numbers = #tpu.dot_dimension_numbers<[1], [0], [0], [1], [0, 0, 1, 1], [], []>} : vector<8x512xbf16>, vector<512x256xbf16>, vector<8x256xf32> -> vector<8x256xf32>
    %15 = vector.broadcast %1 : vector<1x256xf32> to vector<8x256xf32>
    %16 = arith.addf %14, %15 : vector<8x256xf32>
    %cst_13 = arith.constant 0.000000e+00 : f32
    %17 = vector.broadcast %cst_13 : f32 to vector<8x256xf32>
    %18 = arith.maximumf %16, %17 : vector<8x256xf32>
    %19 = arith.truncf %18 : vector<8x256xf32> to vector<8x256xbf16>
    %c0_14 = arith.constant 0 : index
    %c0_15 = arith.constant 0 : index
    %20 = vector.load %arg4[%c0_14, %c0_15] : memref<256x128xbf16, #tpu.memory_space<vmem>>, vector<256x128xbf16>
    %cst_16 = arith.constant dense<0.000000e+00> : vector<8x128xf32>
    %21 = tpu.matmul %19, %20, %cst_16 {dimension_numbers = #tpu.dot_dimension_numbers<[1], [0], [0], [1], [0, 0, 1, 1], [], []>} : vector<8x256xbf16>, vector<256x128xbf16>, vector<8x128xf32> -> vector<8x128xf32>
    %22 = vector.broadcast %2 : vector<1x128xf32> to vector<8x128xf32>
    %23 = arith.addf %21, %22 : vector<8x128xf32>
    %cst_17 = arith.constant 0.000000e+00 : f32
    %24 = vector.broadcast %cst_17 : f32 to vector<8x128xf32>
    %25 = arith.maximumf %23, %24 : vector<8x128xf32>
    %26 = arith.truncf %25 : vector<8x128xf32> to vector<8x128xbf16>
    %c0_18 = arith.constant 0 : index
    %c0_19 = arith.constant 0 : index
    %27 = vector.load %arg5[%c0_18, %c0_19] : memref<128x768xbf16, #tpu.memory_space<vmem>>, vector<128x768xbf16>
    %cst_20 = arith.constant dense<0.000000e+00> : vector<8x768xf32>
    %28 = tpu.matmul %26, %27, %cst_20 {dimension_numbers = #tpu.dot_dimension_numbers<[1], [0], [0], [1], [0, 0, 1, 1], [], []>} : vector<8x128xbf16>, vector<128x768xbf16>, vector<8x768xf32> -> vector<8x768xf32>
    %29 = vector.broadcast %3 : vector<1x768xf32> to vector<8x768xf32>
    %30 = arith.addf %28, %29 : vector<8x768xf32>
    %cst_21 = arith.constant 0.000000e+00 : f32
    %31 = vector.broadcast %cst_21 : f32 to vector<8x768xf32>
    %32 = arith.maximumf %30, %31 : vector<8x768xf32>
    %33 = arith.truncf %32 : vector<8x768xf32> to vector<8x768xbf16>
    %c0_22 = arith.constant 0 : index
    %c0_23 = arith.constant 0 : index
    %34 = vector.load %arg6[%c0_22, %c0_23] : memref<768x128xbf16, #tpu.memory_space<vmem>>, vector<768x128xbf16>
    %cst_24 = arith.constant dense<0.000000e+00> : vector<8x128xf32>
    %35 = tpu.matmul %33, %34, %cst_24 {dimension_numbers = #tpu.dot_dimension_numbers<[1], [0], [0], [1], [0, 0, 1, 1], [], []>} : vector<8x768xbf16>, vector<768x128xbf16>, vector<8x128xf32> -> vector<8x128xf32>
    %36 = vector.broadcast %4 : vector<1x128xf32> to vector<8x128xf32>
    %37 = arith.addf %35, %36 : vector<8x128xf32>
    %38 = tpu.iota {dimensions = array<i32: 1>} : vector<8x128xi32>
    %c0_i32 = arith.constant 0 : i32
    %39 = vector.broadcast %c0_i32 : i32 to vector<8x128xi32>
    %40 = arith.cmpi sge, %38, %39 : vector<8x128xi32>
    %c8_i32 = arith.constant 8 : i32
    %41 = vector.broadcast %c8_i32 : i32 to vector<8x128xi32>
    %42 = arith.cmpi slt, %38, %41 : vector<8x128xi32>
    %43 = arith.andi %40, %42 : vector<8x128xi1>
    %c8_i32_25 = arith.constant 8 : i32
    %44 = vector.broadcast %c8_i32_25 : i32 to vector<8x128xi32>
    %45 = arith.cmpi sge, %38, %44 : vector<8x128xi32>
    %c48_i32 = arith.constant 48 : i32
    %46 = vector.broadcast %c48_i32 : i32 to vector<8x128xi32>
    %47 = arith.cmpi slt, %38, %46 : vector<8x128xi32>
    %48 = arith.andi %45, %47 : vector<8x128xi1>
    %c48_i32_26 = arith.constant 48 : i32
    %49 = vector.broadcast %c48_i32_26 : i32 to vector<8x128xi32>
    %50 = arith.cmpi sge, %38, %49 : vector<8x128xi32>
    %c58_i32 = arith.constant 58 : i32
    %51 = vector.broadcast %c58_i32 : i32 to vector<8x128xi32>
    %52 = arith.cmpi slt, %38, %51 : vector<8x128xi32>
    %53 = arith.andi %50, %52 : vector<8x128xi1>
    %c58_i32_27 = arith.constant 58 : i32
    %54 = vector.broadcast %c58_i32_27 : i32 to vector<8x128xi32>
    %55 = arith.cmpi sge, %38, %54 : vector<8x128xi32>
    %c62_i32 = arith.constant 62 : i32
    %56 = vector.broadcast %c62_i32 : i32 to vector<8x128xi32>
    %57 = arith.cmpi slt, %38, %56 : vector<8x128xi32>
    %58 = arith.andi %55, %57 : vector<8x128xi1>
    %c62_i32_28 = arith.constant 62 : i32
    %59 = vector.broadcast %c62_i32_28 : i32 to vector<8x128xi32>
    %60 = arith.cmpi sge, %38, %59 : vector<8x128xi32>
    %c63_i32 = arith.constant 63 : i32
    %61 = vector.broadcast %c63_i32 : i32 to vector<8x128xi32>
    %62 = arith.cmpi slt, %38, %61 : vector<8x128xi32>
    %63 = arith.andi %60, %62 : vector<8x128xi1>
    %64 = arith.ori %43, %53 : vector<8x128xi1>
    %cst_29 = arith.constant -1.000000e+30 : f32
    %65 = vector.broadcast %cst_29 : f32 to vector<8x128xf32>
    %66 = arith.select %43, %37, %65 : vector<8x128xi1>, vector<8x128xf32>
    %cst_30 = arith.constant dense<0xFF800000> : vector<8xf32>
    %67 = vector.multi_reduction <maximumf>, %66, %cst_30 [1] : vector<8x128xf32> to vector<8xf32>
    %68 = vector.shape_cast %67 : vector<8xf32> to vector<8x1xf32>
    %cst_31 = arith.constant -1.000000e+30 : f32
    %69 = vector.broadcast %cst_31 : f32 to vector<8x128xf32>
    %70 = arith.select %53, %37, %69 : vector<8x128xi1>, vector<8x128xf32>
    %cst_32 = arith.constant dense<0xFF800000> : vector<8xf32>
    %71 = vector.multi_reduction <maximumf>, %70, %cst_32 [1] : vector<8x128xf32> to vector<8xf32>
    %72 = vector.shape_cast %71 : vector<8xf32> to vector<8x1xf32>
    %73 = vector.shape_cast %68 : vector<8x1xf32> to vector<8x1xf32>
    %74 = vector.broadcast %73 : vector<8x1xf32> to vector<8x128xf32>
    %75 = vector.shape_cast %72 : vector<8x1xf32> to vector<8x1xf32>
    %76 = vector.broadcast %75 : vector<8x1xf32> to vector<8x128xf32>
    %77 = arith.select %43, %74, %76 : vector<8x128xi1>, vector<8x128xf32>
    %78 = arith.subf %37, %77 : vector<8x128xf32>
    %cst_33 = arith.constant 0.000000e+00 : f32
    %79 = vector.broadcast %cst_33 : f32 to vector<8x128xf32>
    %80 = arith.select %64, %78, %79 : vector<8x128xi1>, vector<8x128xf32>
    %81 = math.exp %80 : vector<8x128xf32>
    %cst_34 = arith.constant 0.000000e+00 : f32
    %82 = vector.broadcast %cst_34 : f32 to vector<8x128xf32>
    %83 = arith.select %43, %81, %82 : vector<8x128xi1>, vector<8x128xf32>
    %cst_35 = arith.constant dense<0.000000e+00> : vector<8xf32>
    %84 = vector.multi_reduction <add>, %83, %cst_35 [1] : vector<8x128xf32> to vector<8xf32>
    %85 = vector.shape_cast %84 : vector<8xf32> to vector<8x1xf32>
    %cst_36 = arith.constant 0.000000e+00 : f32
    %86 = vector.broadcast %cst_36 : f32 to vector<8x128xf32>
    %87 = arith.select %53, %81, %86 : vector<8x128xi1>, vector<8x128xf32>
    %cst_37 = arith.constant dense<0.000000e+00> : vector<8xf32>
    %88 = vector.multi_reduction <add>, %87, %cst_37 [1] : vector<8x128xf32> to vector<8xf32>
    %89 = vector.shape_cast %88 : vector<8xf32> to vector<8x1xf32>
    %90 = tpu.reciprocal %85 {approx = true} : vector<8x1xf32> -> vector<8x1xf32>
    %91 = tpu.reciprocal %89 {approx = true} : vector<8x1xf32> -> vector<8x1xf32>
    %92 = vector.shape_cast %90 : vector<8x1xf32> to vector<8x1xf32>
    %93 = vector.broadcast %92 : vector<8x1xf32> to vector<8x128xf32>
    %94 = vector.shape_cast %91 : vector<8x1xf32> to vector<8x1xf32>
    %95 = vector.broadcast %94 : vector<8x1xf32> to vector<8x128xf32>
    %96 = arith.select %43, %93, %95 : vector<8x128xi1>, vector<8x128xf32>
    %97 = arith.mulf %81, %96 : vector<8x128xf32>
    %98 = arith.ori %48, %63 : vector<8x128xi1>
    %99 = arith.ori %98, %58 : vector<8x128xi1>
    %cst_38 = arith.constant 2.000000e+00 : f32
    %100 = vector.broadcast %cst_38 : f32 to vector<8x128xf32>
    %101 = arith.mulf %100, %37 : vector<8x128xf32>
    %102 = arith.select %58, %101, %37 : vector<8x128xi1>, vector<8x128xf32>
    %cst_39 = arith.constant 0.000000e+00 : f32
    %103 = vector.broadcast %cst_39 : f32 to vector<8x128xf32>
    %104 = arith.select %99, %102, %103 : vector<8x128xi1>, vector<8x128xf32>
    %cst_40 = arith.constant 0.000000e+00 : f32
    %105 = vector.broadcast %cst_40 : f32 to vector<8x128xf32>
    %106 = arith.subf %105, %104 : vector<8x128xf32>
    %107 = math.exp %106 : vector<8x128xf32>
    %cst_41 = arith.constant 1.000000e+00 : f32
    %108 = vector.broadcast %cst_41 : f32 to vector<8x128xf32>
    %109 = arith.addf %108, %107 : vector<8x128xf32>
    %110 = tpu.reciprocal %109 {approx = true} : vector<8x128xf32> -> vector<8x128xf32>
    %cst_42 = arith.constant 2.000000e+00 : f32
    %111 = vector.broadcast %cst_42 : f32 to vector<8x128xf32>
    %112 = arith.mulf %111, %110 : vector<8x128xf32>
    %cst_43 = arith.constant 1.000000e+00 : f32
    %113 = vector.broadcast %cst_43 : f32 to vector<8x128xf32>
    %114 = arith.subf %112, %113 : vector<8x128xf32>
    %115 = arith.select %58, %114, %110 : vector<8x128xi1>, vector<8x128xf32>
    %116 = arith.select %99, %115, %37 : vector<8x128xi1>, vector<8x128xf32>
    %117 = arith.select %64, %97, %116 : vector<8x128xi1>, vector<8x128xf32>
    %c0_44 = arith.constant 0 : index
    %c0_45 = arith.constant 0 : index
    %118 = vector.load %arg8[%c0_44, %c0_45] : memref<8x128xf32, #tpu.memory_space<vmem>>, vector<8x128xf32>
    tpu.vector_store %arg8[%c0_44, %c0_45], %117 {strides = array<i32>} : memref<8x128xf32, #tpu.memory_space<vmem>>, vector<8x128xf32>,
    return
  }
  func.func @transform_0(%arg0: i32) -> (i32, i32) {
    %c0_i32 = arith.constant 0 : i32
    %c0_i32_0 = arith.constant 0 : i32
    return %arg0, %c0_i32 : i32, i32
  }
  func.func @transform_1(%arg0: i32) -> (i32, i32) {
    %c0_i32 = arith.constant 0 : i32
    %c0_i32_0 = arith.constant 0 : i32
    %c0_i32_1 = arith.constant 0 : i32
    return %c0_i32, %c0_i32_0 : i32, i32
  }
  func.func @transform_2(%arg0: i32) -> (i32, i32) {
    %c0_i32 = arith.constant 0 : i32
    %c0_i32_0 = arith.constant 0 : i32
    %c0_i32_1 = arith.constant 0 : i32
    return %c0_i32, %c0_i32_0 : i32, i32
  }
  func.func @transform_3(%arg0: i32) -> (i32, i32) {
    %c0_i32 = arith.constant 0 : i32
    %c0_i32_0 = arith.constant 0 : i32
    %c0_i32_1 = arith.constant 0 : i32
    return %c0_i32, %c0_i32_0 : i32, i32
  }
  func.func @transform_4(%arg0: i32) -> (i32, i32) {
    %c0_i32 = arith.constant 0 : i32
    %c0_i32_0 = arith.constant 0 : i32
    %c0_i32_1 = arith.constant 0 : i32
    return %c0_i32, %c0_i32_0 : i32, i32
  }
  func.func @transform_5(%arg0: i32) -> (i32, i32) {
    %c0_i32 = arith.constant 0 : i32
    %c0_i32_0 = arith.constant 0 : i32
    %c0_i32_1 = arith.constant 0 : i32
    return %c0_i32, %c0_i32_0 : i32, i32
  }
  func.func @transform_6(%arg0: i32) -> (i32, i32) {
    %c0_i32 = arith.constant 0 : i32
    %c0_i32_0 = arith.constant 0 : i32
    %c0_i32_1 = arith.constant 0 : i32
    return %c0_i32, %c0_i32_0 : i32, i32
  }
  func.func @transform_7(%arg0: i32) -> (i32, i32) {
    %c0_i32 = arith.constant 0 : i32
    %c0_i32_0 = arith.constant 0 : i32
    return %arg0, %c0_i32 : i32, i32
  }
}

</mosaic_0001>

<bundles_post_ra>
// kernel: resource_policy_forward.1
= control target key start
LH: loop header
LB: loop body
LE: loop exit
PB: predicated region body
PF: predicated region fallthrough
CT: control target
= control target key end

     0   :  { %12 = vsyncpa [#allocation3], 0  ;;  %s2754_s0 = inlined_call_operand.vmem [shape: bf16[8,32], index: 0, kind: input, shape index: {}]   ;;  %s2755_s1 = inlined_call_operand.hbm [shape: bf16[32,512], index: 1, kind: input, shape index: {}]   ;;  %s2756_s2 = inlined_call_operand.hbm [shape: bf16[512,256], index: 2, kind: input, shape index: {}]   ;;  %s2757_s3 = inlined_call_operand.hbm [shape: bf16[256,128], index: 3, kind: input, shape index: {}]   ;;  %s2758_s4 = inlined_call_operand.hbm [shape: bf16[128,768], index: 4, kind: input, shape index: {}]   ;;  %s2759_s5 = inlined_call_operand.hbm [shape: bf16[768,128], index: 5, kind: input, shape index: {}]   ;;  %s2760_s6 = inlined_call_operand.vmem [shape: f32[1,1792], index: 6, kind: input, shape index: {}]   ;;  %s2761_s7 = inlined_call_operand.vmem [shape: f32[8,128], index: 7, kind: output, shape index: {}]  }
   0x1   :  { %13 = vsyncpa [#allocation5], 0 }
   0x2   :  { %14 = vsyncpa [#allocation8], 0  ;;  %s2598_s24 = smov [#allocation4]  }
   0x3   :  { %s34_s25 = sshll.u32 %s2598_s24, 4  ;;  %s35_s25 = int_to_ptr.vmem [resolvable:$true] %s34_s25 }
   0x4   :  { %s2500_s26 = scalar_lea.vmem %s35_s25, 8192  ;;  %p2505_p1 = scmp.lt.s32.totalorder %s35_s25, %s35_s25 }
   0x5   :  { %p2501_p0 = scmp.ne.s32.totalorder %s35_s25, %s2500_s26  ;;  %p2506_p2 = scmp.lt.s32.totalorder %s2500_s26, %s2500_s26 }
   0x7   :  { %p2507_p3 = por %p2506_p2, %p2505_p1 }
   0x9   :  { %p2508_p4 = pnand %p2507_p3, %p2501_p0 }
   0xb   :  { %2511 = shalt.err (!%p2508_p4)
}
   0xc   :  { %s2599_s27 = smov 128   ;;  %s2600_s28 = smov 8  }
   0xd   :  { %40 = dma.hbm_to_vmem [thread:$0]  %s2756_s2, 8192, %s35_s25, [#allocation5], %s2599_s27, %s2599_s27, %s2600_s28  }
   0xe   :  { %s2601_s8 = smov [#allocation7]  }
   0xf   :  { %s58_s9 = sshll.u32 %s2601_s8, 4  ;;  %s59_s9 = int_to_ptr.vmem [resolvable:$true] %s58_s9 }
  0x10   :  { %s2520_s10 = scalar_lea.vmem %s59_s9, 6144  ;;  %p2525_p6 = scmp.lt.s32.totalorder %s59_s9, %s59_s9 }
  0x11   :  { %p2521_p5 = scmp.ne.s32.totalorder %s59_s9, %s2520_s10  ;;  %p2526_p7 = scmp.lt.s32.totalorder %s2520_s10, %s2520_s10 }
  0x13   :  { %p2527_p8 = por %p2526_p7, %p2525_p6 }
  0x15   :  { %p2528_p9 = pnand %p2527_p8, %p2521_p5 }
  0x17   :  { %2531 = shalt.err (!%p2528_p9)
}
  0x18   :  { %s2602_s11 = smov 384   ;;  %s2603_s12 = smov 24  }
  0x19   :  { %64 = dma.hbm_to_vmem [thread:$0]  %s2758_s4, 6144, %s59_s9, [#allocation8], %s2602_s11, %s2602_s11, %s2603_s12  }
  0x1a   :  { %s2604_s15 = smov [#allocation2]  }
  0x1b   :  { %s22_s16 = sshll.u32 %s2604_s15, 4  ;;  %s23_s16 = int_to_ptr.vmem [resolvable:$true] %s22_s16 }
  0x1c   :  { %s2540_s2 = scalar_lea.vmem %s23_s16, 1024  ;;  %p2545_p11 = scmp.lt.s32.totalorder %s23_s16, %s23_s16 }
  0x1d   :  { %p2541_p10 = scmp.ne.s32.totalorder %s23_s16, %s2540_s2  ;;  %p2546_p12 = scmp.lt.s32.totalorder %s2540_s2, %s2540_s2 }
  0x1f   :  { %p2547_p13 = por %p2546_p12, %p2545_p11 }
  0x21   :  { %p2548_p0 = pnand %p2547_p13, %p2541_p10 }
  0x23   :  { %2551 = shalt.err (!%p2548_p0)
}
  0x24   :  { %s2605_s17 = smov 256   ;;  %s2606_s18 = smov 16  }
  0x25   :  { %28 = dma.hbm_to_vmem [thread:$0]  %s2755_s1, 1024, %s23_s16, [#allocation3], %s2605_s17, %s2605_s17, %s2606_s18  }
  0x26   :  { %s2607_s21 = smov [#allocation6]  }
  0x27   :  { %s46_s22 = sshll.u32 %s2607_s21, 4  ;;  %s47_s22 = int_to_ptr.vmem [resolvable:$true] %s46_s22 }
  0x28   :  { %s2560_s4 = scalar_lea.vmem %s47_s22, 2048  ;;  %p2565_p2 = scmp.lt.s32.totalorder %s47_s22, %s47_s22 }
  0x29   :  { %p2561_p1 = scmp.ne.s32.totalorder %s47_s22, %s2560_s4  ;;  %p2566_p3 = scmp.lt.s32.totalorder %s2560_s4, %s2560_s4 }
  0x2b   :  { %p2567_p4 = por %p2566_p3, %p2565_p2 }
  0x2d   :  { %p2568_p5 = pnand %p2567_p4, %p2561_p1 }
  0x2f   :  { %2571 = shalt.err (!%p2568_p5)
}
  0x30   :  { %s2608_s23 = smov 64   ;;  %s2609_s24 = smov 4  }
  0x31   :  { %52 = dma.hbm_to_vmem [thread:$0]  %s2757_s3, 2048, %s47_s22, [#allocation5], %s2608_s23, %s2608_s23, %s2609_s24  }
  0x32   :  { %s2610_s27 = smov [#allocation9]  }
  0x33   :  { %s70_s28 = sshll.u32 %s2610_s27, 4  ;;  %s71_s28 = int_to_ptr.vmem [resolvable:$true] %s70_s28 }
  0x34   :  { %s2580_s1 = scalar_lea.vmem %s71_s28, 6144  ;;  %p2585_p7 = scmp.lt.s32.totalorder %s71_s28, %s71_s28 }
  0x35   :  { %p2581_p6 = scmp.ne.s32.totalorder %s71_s28, %s2580_s1  ;;  %p2586_p8 = scmp.lt.s32.totalorder %s2580_s1, %s2580_s1 }
  0x37   :  { %p2587_p9 = por %p2586_p8, %p2585_p7 }
  0x39   :  { %p2588_p10 = pnand %p2587_p9, %p2581_p6 }
  0x3b   :  { %2591 = shalt.err (!%p2588_p10)
}
  0x3c   :  { %76 = dma.hbm_to_vmem [thread:$0]  %s2759_s5, 6144, %s71_s28, [#allocation8], %s2608_s23, %s2608_s23, %s2609_s24  }
  0x3d   :  { %2592 = dma.done.wait [#allocation3], 1024  }
  0x3e   :  { %2593 = vsyncadd [#allocation3], 4294966272 }
  0x3f   :  { %2594 = dma.done.wait [#allocation5], 10240  }
  0x40   :  { %2595 = vsyncadd [#allocation5], 4294957056 }
  0x41   :  { %2596 = dma.done.wait [#allocation8], 12288  }
  0x42   :  { %2597 = vsyncadd [#allocation8], 4294955008  ;;  %v2611_v0 = vmov 0   ;;  %v2238_v1 = vld [vmem:[#allocation2 + $0x24] ss:$16 sps:$4 sm:$0xff]   ;;  %vm170_vm0 = vcmask 261120  }
  0x43   :  { %206 = vmatprep.mubr.bf16.mxu1 %v2611_v0  ;;  %v2240_v2 = vld [vmem:[#allocation2 + $0x20] ss:$16 sps:$4 sm:$0xff]   ;;  %186 = vmatprep.subr.bf16.mxu1 %v2238_v1  ;;  %v2241_v3 = vld [vmem:[#allocation2 + $0x4] ss:$16 sps:$4 sm:$0xff]   ;;  %v2246_v5 = vld [vmem:[#allocation2 + $0x2c] ss:$16 sps:$4 sm:$0xff]  }
  0x44   :  { %187 = vmatpush1.bf16.msra.mxu1 %v2240_v2  ;;  %v2243_v4 = vld [vmem:[#allocation2] ss:$16 sps:$4 sm:$0xff]   ;;  %v2244_v7 = vld [vmem:[#allocation2 + $0x28] ss:$16 sps:$4 sm:$0xff]   ;;  %v2250_v8 = vld [vmem:[#allocation4 + $0x74] ss:$8 sps:$4 sm:$0xff]  }
  0x45   :  { %188 = vmatprep.subr.bf16.mxu1 %v2241_v3  ;;  %v100_v6 = vld [vmem:[%s2754_s0] sm:$0xf]  ;;  %v2252_v9 = vld [vmem:[#allocation4 + $0x70] ss:$8 sps:$4 sm:$0xff]   ;;  %v2253_v10 = vld [vmem:[#allocation4 + $0x64] ss:$8 sps:$4 sm:$0xff]   ;;  %659 = vmatprep.subr.bf16.mxu0 %v2250_v8 }
  0x46   :  { %v2249_v11 = vld [vmem:[#allocation2 + $0xc] ss:$16 sps:$4 sm:$0xff]   ;;  %660 = vmatpush1.bf16.msra.mxu0 %v2252_v9  ;;  %v2255_v12 = vld [vmem:[#allocation4 + $0x60] ss:$8 sps:$4 sm:$0xff]   ;;  %v2261_v16 = vld [vmem:[#allocation4 + $0x50] ss:$8 sps:$4 sm:$0xff]  }
  0x47   :  { %661 = vmatprep.subr.bf16.mxu0 %v2253_v10  ;;  %v2256_v13 = vld [vmem:[#allocation4 + $0x54] ss:$8 sps:$4 sm:$0xff]   ;;  %v2247_v14 = vld [vmem:[#allocation2 + $0x8] ss:$16 sps:$4 sm:$0xff]   ;;  %v2262_v17 = vld [vmem:[#allocation4 + $0x44] ss:$8 sps:$4 sm:$0xff]  }
  0x48   :  { %189 = vmatpush1.bf16.msra.mxu1 %v2243_v4  ;;  %v2260_v15 = vld [vmem:[#allocation4 + $0x174] ss:$8 sps:$4 sm:$0xff]   ;;  %v2258_v18 = vld [vmem:[#allocation4 + $0x170] ss:$8 sps:$4 sm:$0xff]   ;;  %v2266_v19 = vld [vmem:[#allocation4 + $0x164] ss:$8 sps:$4 sm:$0xff]  }
  0x49   :  { %227 = vmatprep.subr.bf16.mxu1 %v2246_v5  ;;  %v2267_v20 = vld [vmem:[#allocation4 + $0x40] ss:$8 sps:$4 sm:$0xff]   ;;  %v2268_v21 = vld [vmem:[#allocation4 + $0x34] ss:$8 sps:$4 sm:$0xff]   ;;  %v2273_v24 = vld [vmem:[#allocation4 + $0x30] ss:$8 sps:$4 sm:$0xff]  }
  0x4a   :  { %662 = vmatpush1.bf16.msra.mxu0 %v2255_v12  ;;  %v2264_v22 = vld [vmem:[#allocation4 + $0x160] ss:$8 sps:$4 sm:$0xff]   ;;  %v2272_v23 = vld [vmem:[#allocation4 + $0x154] ss:$8 sps:$4 sm:$0xff]   ;;  %v2274_v25 = vld [vmem:[#allocation4 + $0x24] ss:$8 sps:$4 sm:$0xff]   ;;  %v110_v12 = vlaneseq }
  0x4b   :  { %1955 = vmatmul.mubr.msk.bf16.vlgmr.msra.gmra.mxu1 %vm170_vm0, %v100_v6  ;;  %663 = vmatprep.subr.bf16.mxu0 %v2256_v13  ;;  %v2270_v26 = vld [vmem:[#allocation4 + $0x150] ss:$8 sps:$4 sm:$0xff]   ;;  %v2278_v27 = vld [vmem:[#allocation4 + $0x144] ss:$8 sps:$4 sm:$0xff]   ;;  %v2279_v28 = vld [vmem:[#allocation4 + $0x20] ss:$8 sps:$4 sm:$0xff]  }
  0x4c   :  { %228 = vmatpush1.bf16.msra.mxu1 %v2244_v7  ;;  %247 = vmatprep.mubr.bf16.mxu1 %v2611_v0  ;;  %v2280_v29 = vld [vmem:[#allocation4 + $0x14] ss:$8 sps:$4 sm:$0xff]   ;;  %v2276_v30 = vld [vmem:[#allocation4 + $0x140] ss:$8 sps:$4 sm:$0xff]   ;;  %v2285_v32 = vld [vmem:[#allocation4 + $0x10] ss:$8 sps:$4 sm:$0xff]  }
  0x4d   :  { %229 = vmatprep.subr.bf16.mxu1 %v2249_v11  ;;  %v2284_v31 = vld [vmem:[#allocation4 + $0x134] ss:$8 sps:$4 sm:$0xff]   ;;  %v2286_v33 = vld [vmem:[#allocation4 + $0x4] ss:$8 sps:$4 sm:$0xff]   ;;  %v2282_v34 = vld [vmem:[#allocation4 + $0x130] ss:$8 sps:$4 sm:$0xff]  }
  0x4e   :  { %664 = vmatpush1.bf16.msra.mxu0 %v2261_v16  ;;  %v2290_v35 = vld [vmem:[#allocation4 + $0x124] ss:$8 sps:$4 sm:$0xff]   ;;  %v2291_v36 = vld [vmem:[#allocation4] ss:$8 sps:$4 sm:$0xff]   ;;  %v2292_v37 = vld [vmem:[#allocation4 + $0xf4] ss:$8 sps:$4 sm:$0xff]  }
  0x4f   :  { %665 = vmatprep.subr.bf16.mxu0 %v2262_v17  ;;  %v2288_v38 = vld [vmem:[#allocation4 + $0x120] ss:$8 sps:$4 sm:$0xff]   ;;  %v2296_v39 = vld [vmem:[#allocation4 + $0x114] ss:$8 sps:$4 sm:$0xff]   ;;  %v2297_v40 = vld [vmem:[#allocation4 + $0xf0] ss:$8 sps:$4 sm:$0xff]  }
  0x50   :  { %230 = vmatpush1.bf16.msra.mxu1 %v2247_v14  ;;  %v2298_v41 = vld [vmem:[#allocation4 + $0xe4] ss:$8 sps:$4 sm:$0xff]   ;;  %v2294_v42 = vld [vmem:[#allocation4 + $0x110] ss:$8 sps:$4 sm:$0xff]   ;;  %v2303_v44 = vld [vmem:[#allocation4 + $0xe0] ss:$8 sps:$4 sm:$0xff]  }
  0x51   :  { %700 = vmatprep.subr.bf16.mxu1 %v2260_v15  ;;  %v2302_v43 = vld [vmem:[#allocation4 + $0x104] ss:$8 sps:$4 sm:$0xff]   ;;  %v2304_v45 = vld [vmem:[#allocation4 + $0xd4] ss:$8 sps:$4 sm:$0xff]   ;;  %v2300_v46 = vld [vmem:[#allocation4 + $0x100] ss:$8 sps:$4 sm:$0xff]  }
  0x52   :  { %666 = vmatpush1.bf16.msra.mxu0 %v2267_v20  ;;  %v2308_v47 = vld [vmem:[#allocation4 + $0x1f4] ss:$8 sps:$4 sm:$0xff]   ;;  %v2309_v48 = vld [vmem:[#allocation4 + $0xd0] ss:$8 sps:$4 sm:$0xff]   ;;  %v2310_v49 = vld [vmem:[#allocation4 + $0xc4] ss:$8 sps:$4 sm:$0xff]  }
  0x53   :  { %1956 = vmatmul.mubr.msk.bf16.vlgmr.msra.gmra.mxu1 %vm170_vm0, %v100_v6  ;;  %667 = vmatprep.subr.bf16.mxu0 %v2268_v21  ;;  %v2306_v50 = vld [vmem:[#allocation4 + $0x1f0] ss:$8 sps:$4 sm:$0xff]   ;;  %v2314_v51 = vld [vmem:[#allocation4 + $0x1e4] ss:$8 sps:$4 sm:$0xff]   ;;  %v2315_v52 = vld [vmem:[#allocation4 + $0xc0] ss:$8 sps:$4 sm:$0xff]  }
  0x54   :  { %701 = vmatpush1.bf16.msra.mxu1 %v2258_v18  ;;  %v2316_v53 = vld [vmem:[#allocation4 + $0xb4] ss:$8 sps:$4 sm:$0xff]   ;;  %v2312_v54 = vld [vmem:[#allocation4 + $0x1e0] ss:$8 sps:$4 sm:$0xff]   ;;  %v2321_v56 = vld [vmem:[#allocation4 + $0xb0] ss:$8 sps:$4 sm:$0xff]  }
  0x55   :  { %702 = vmatprep.subr.bf16.mxu1 %v2266_v19  ;;  %v2320_v55 = vld [vmem:[#allocation4 + $0x1d4] ss:$8 sps:$4 sm:$0xff]   ;;  %v2322_v57 = vld [vmem:[#allocation4 + $0xa4] ss:$8 sps:$4 sm:$0xff]   ;;  %v2318_v58 = vld [vmem:[#allocation4 + $0x1d0] ss:$8 sps:$4 sm:$0xff]  }
  0x56   :  { %668 = vmatpush1.bf16.msra.mxu0 %v2273_v24  ;;  %v2326_v59 = vld [vmem:[#allocation4 + $0x1c4] ss:$8 sps:$4 sm:$0xff]   ;;  %v2327_v60 = vld [vmem:[#allocation4 + $0xa0] ss:$8 sps:$4 sm:$0xff]   ;;  %v2328_v62 = vld [vmem:[#allocation4 + $0x94] ss:$8 sps:$4 sm:$0xff]  }
  0x57   :  { %669 = vmatprep.subr.bf16.mxu0 %v2274_v25  ;;  %v2324_v61 = vld [vmem:[#allocation4 + $0x1c0] ss:$8 sps:$4 sm:$0xff]   ;;  %v2332_v63 = vld [vmem:[#allocation4 + $0x1b4] ss:$8 sps:$4 sm:$0xff]   ;;  %v2330_v1 = vld [vmem:[#allocation4 + $0x1b0] ss:$8 sps:$4 sm:$0xff]  }
  0x58   :  { %703 = vmatpush1.bf16.msra.mxu1 %v2264_v22  ;;  %v2333_v2 = vld [vmem:[#allocation4 + $0x90] ss:$8 sps:$4 sm:$0xff]   ;;  %v2334_v3 = vld [vmem:[#allocation4 + $0x84] ss:$8 sps:$4 sm:$0xff]   ;;  %v2336_v5 = vld [vmem:[#allocation4 + $0x1a0] ss:$8 sps:$4 sm:$0xff]  }
  0x59   :  { %704 = vmatprep.subr.bf16.mxu1 %v2272_v23  ;;  %v2338_v4 = vld [vmem:[#allocation4 + $0x1a4] ss:$8 sps:$4 sm:$0xff]   ;;  %v2339_v6 = vld [vmem:[#allocation4 + $0x80] ss:$8 sps:$4 sm:$0xff]   ;;  %v2342_v7 = vld [vmem:[#allocation4 + $0x194] ss:$8 sps:$4 sm:$0xff]  }
  0x5a   :  { %670 = vmatpush1.bf16.msra.mxu0 %v2279_v28  ;;  %v2340_v8 = vld [vmem:[#allocation4 + $0x190] ss:$8 sps:$4 sm:$0xff]   ;;  %v2345_v9 = vld [vmem:[#allocation4 + $0x184] ss:$8 sps:$4 sm:$0xff]   ;;  %v2343_v10 = vld [vmem:[#allocation4 + $0x180] ss:$8 sps:$4 sm:$0xff]  }
  0x5b   :  { %671 = vmatprep.subr.bf16.mxu0 %v2280_v29  ;;  %v2346_v11 = vld [vmem:[#allocation6 + $0x78] sm:$0xff]   ;;  %v2675_v13 = vshrl.u32 %v110_v12, 7  ;;  %v95_v15 = vld [vmem:[%s2760_s6] sm:$0xf] }
  0x5c   :  { %705 = vmatpush1.bf16.msra.mxu1 %v2270_v26 }
  0x5d   :  { %706 = vmatprep.subr.bf16.mxu1 %v2278_v27  ;;  %v2678_v14 = vsub.s32 0, %v2675_v13  ;;  %v2684_v16 = vsub.s32 1, %v2675_v13  ;;  %v120_v21 = vsub.s32 2, %v2675_v13  ;;  %v124_v24 = vsub.s32 3, %v2675_v13 }
  0x5e   :  { %672 = vmatpush1.bf16.msra.mxu0 %v2285_v32  ;;  %v2347_v32 = vld [vmem:[#allocation6 + $0x38] sm:$0xff]  }
  0x5f   :  { %673 = vmatprep.subr.bf16.mxu0 %v2286_v33  ;;  %v113_v17 = vrot.slane %v95_v15, %v2678_v14  ;;  %v117_v18 = vrot.slane %v95_v15, %v2684_v16  ;;  %v121_v27 = vrot.slane %v95_v15, %v120_v21 }
  0x60   :  { %707 = vmatpush1.bf16.msra.mxu1 %v2276_v30 }
  0x61   :  { %708 = vmatprep.subr.bf16.mxu1 %v2284_v31  ;;  %v125_v31 = vrot.slane %v95_v15, %v124_v24 }
  0x62   :  { %674 = vmatpush1.bf16.msra.mxu0 %v2291_v36 }
  0x63   :  { %675 = vmatprep.subr.bf16.mxu0 %v2292_v37 }
  0x64   :  { %709 = vmatpush1.bf16.msra.mxu1 %v2282_v34 }
  0x65   :  { %710 = vmatprep.subr.bf16.mxu1 %v2290_v35  ;;  %v2348_v35 = vld [vmem:[#allocation6 + $0x70] sm:$0xff]  }
  0x66   :  { %676 = vmatpush2.bf16.msra.mxu0 %v2297_v40 }
  0x67   :  { %677 = vmatprep.subr.bf16.mxu0 %v2298_v41 }
  0x68   :  { %711 = vmatpush1.bf16.msra.mxu1 %v2288_v38 }
  0x69   :  { %712 = vmatprep.subr.bf16.mxu1 %v2296_v39  ;;  %v2349_v39 = vld [vmem:[#allocation6 + $0x30] sm:$0xff]  }
  0x6a   :  { %678 = vmatpush2.bf16.msra.mxu0 %v2303_v44 }
  0x6b   :  { %679 = vmatprep.subr.bf16.mxu0 %v2304_v45 }
  0x6c   :  { %713 = vmatpush1.bf16.msra.mxu1 %v2294_v42  ;;  %v2350_v42 = vld [vmem:[#allocation6 + $0x68] sm:$0xff]  }
  0x6d   :  { %714 = vmatprep.subr.bf16.mxu1 %v2302_v43 }
  0x6e   :  { %680 = vmatpush2.bf16.msra.mxu0 %v2309_v48  ;;  %v2352_v48 = vld [vmem:[#allocation6 + $0x60] sm:$0xff]  }
  0x6f   :  { %681 = vmatprep.subr.bf16.mxu0 %v2310_v49  ;;  %v2353_v49 = vld [vmem:[#allocation6 + $0x20] sm:$0xff]  }
  0x70   :  { %715 = vmatpush1.bf16.msra.mxu1 %v2300_v46  ;;  %v2351_v46 = vld [vmem:[#allocation6 + $0x28] sm:$0xff]  }
  0x71   :  { %716 = vmatprep.subr.bf16.mxu1 %v2308_v47 }
  0x72   :  { %682 = vmatpush2.bf16.msra.mxu0 %v2315_v52  ;;  %v2356_v52 = vld [vmem:[#allocation6 + $0x50] sm:$0xff]  }
  0x73   :  { %683 = vmatprep.subr.bf16.mxu0 %v2316_v53  ;;  %v2357_v53 = vld [vmem:[#allocation6 + $0x10] sm:$0xff]  }
  0x74   :  { %717 = vmatpush2.bf16.msra.mxu1 %v2306_v50  ;;  %v2354_v50 = vld [vmem:[#allocation6 + $0x58] sm:$0xff]  }
  0x75   :  { %718 = vmatprep.subr.bf16.mxu1 %v2314_v51  ;;  %v2355_v51 = vld [vmem:[#allocation6 + $0x18] sm:$0xff]  }
  0x76   :  { %684 = vmatpush2.bf16.msra.mxu0 %v2321_v56  ;;  %v2360_v56 = vld [vmem:[#allocation6 + $0x40] sm:$0xff]  }
  0x77   :  { %685 = vmatprep.subr.bf16.mxu0 %v2322_v57  ;;  %v2361_v57 = vld [vmem:[#allocation6] sm:$0xff]  }
  0x78   :  { %719 = vmatpush2.bf16.msra.mxu1 %v2312_v54  ;;  %v2358_v54 = vld [vmem:[#allocation6 + $0x48] sm:$0xff]  }
  0x79   :  { %720 = vmatprep.subr.bf16.mxu1 %v2320_v55  ;;  %v2359_v55 = vld [vmem:[#allocation6 + $0x8] sm:$0xff]  }
  0x7a   :  { %686 = vmatpush2.bf16.msra.mxu0 %v2327_v60  ;;  %v2367_v60 = vld [vmem:[#allocation7 + $0x15c] ss:$24 sps:$4 sm:$0xff]  }
  0x7b   :  { %687 = vmatprep.subr.bf16.mxu0 %v2328_v62  ;;  %v2368_v62 = vld [vmem:[#allocation7 + $0x120] ss:$24 sps:$4 sm:$0xff]  }
  0x7c   :  { %721 = vmatpush2.bf16.msra.mxu1 %v2318_v58  ;;  %v2362_v58 = vld [vmem:[#allocation7 + $0x150] ss:$24 sps:$4 sm:$0xff]  }
  0x7d   :  { %722 = vmatprep.subr.bf16.mxu1 %v2326_v59  ;;  %v2364_v59 = vld [vmem:[#allocation7 + $0x154] ss:$24 sps:$4 sm:$0xff]  }
  0x7e   :  { %688 = vmatpush2.bf16.msra.mxu0 %v2333_v2  ;;  %v2382_v2 = vld [vmem:[#allocation7 + $0xc4] ss:$24 sps:$4 sm:$0xff]  }
  0x7f   :  { %689 = vmatprep.subr.bf16.mxu0 %v2334_v3  ;;  %v2380_v3 = vld [vmem:[#allocation7 + $0xc0] ss:$24 sps:$4 sm:$0xff]  }
  0x80   :  { %723 = vmatpush2.bf16.msra.mxu1 %v2324_v61  ;;  %v2370_v61 = vld [vmem:[#allocation7 + $0x124] ss:$24 sps:$4 sm:$0xff]  }
  0x81   :  { %724 = vmatprep.subr.bf16.mxu1 %v2332_v63  ;;  %v2376_v63 = vld [vmem:[#allocation7 + $0xf4] ss:$24 sps:$4 sm:$0xff]  }
  0x82   :  { %690 = vmatpush2.bf16.msra.mxu0 %v2339_v6  ;;  %v2394_v6 = vld [vmem:[#allocation7 + $0x64] ss:$24 sps:$4 sm:$0xff]  }
  0x83   :  { %2136 = vmatprep.subr.bf16.mxu0 %v2346_v11 }
  0x84   :  { %725 = vmatpush2.bf16.msra.mxu1 %v2330_v1  ;;  %v2374_v1 = vld [vmem:[#allocation7 + $0xf0] ss:$24 sps:$4 sm:$0xff]  }
  0x85   :  { %726 = vmatprep.subr.bf16.mxu1 %v2338_v4  ;;  %v2388_v4 = vld [vmem:[#allocation7 + $0x94] ss:$24 sps:$4 sm:$0xff]  }
  0x88   :  { %727 = vmatpush2.bf16.msra.mxu1 %v2336_v5  ;;  %v2386_v5 = vld [vmem:[#allocation7 + $0x90] ss:$24 sps:$4 sm:$0xff]  }
  0x89   :  { %728 = vmatprep.subr.bf16.mxu1 %v2342_v7  ;;  %v2392_v7 = vld [vmem:[#allocation7 + $0x60] ss:$24 sps:$4 sm:$0xff]  }
  0x8c   :  { %729 = vmatpush2.bf16.msra.mxu1 %v2340_v8  ;;  %v96_v8 = vld [vmem:[%s2760_s6 + $0x4] sm:$0x3] }
  0x8d   :  { %730 = vmatprep.subr.bf16.mxu1 %v2345_v9  ;;  %v332_v11 = vrot.slane %v96_v8, %v2678_v14 }
  0x90   :  { %731 = vmatpush2.bf16.msra.mxu1 %v2343_v10 }
  0x91   :  { %1240 = vmatprep.subr.bf16.mxu1 %v2364_v59 }
 0x10b   :  { %v208_v19 = vpop.f32.mrf.mxu1 }
 0x10c   :  { %v209_v20 = vadd.f32 %v208_v19, %v113_v17  ;;  %v336_v17 = vrot.slane %v96_v8, %v2684_v16  ;;  %v2416_v8 = vld [vmem:[#allocation7 + $0x100] ss:$24 sps:$4 sm:$0xff]  }
 0x10d   :  { %v210_v22 = vpop.f32.mrf.mxu1 }
 0x10e   :  { %v211_v23 = vadd.f32 %v210_v22, %v117_v18  ;;  %v256_v25 = vmax.f32 %v209_v20, 0.0 }
 0x10f   :  { %v212_v26 = vpop.f32.mrf.mxu1 }
 0x110   :  { %v257_v28 = vmax.f32 %v211_v23, 0.0  ;;  %v260_v33 = vpack.c.bf16 %v256_v25, %v256_v25 }
 0x111   :  { %v213_v29 = vpop.f32.mrf.mxu1 }
 0x112   :  { %v261_v30 = vpack.c.bf16 %v257_v28, %v257_v28 }
 0x113   :  { %v249_v34 = vpop.f32.mrf.mxu1 }
 0x114   :  { %v250_v36 = vadd.f32 %v249_v34, %v121_v27  ;;  %691 = vmatprep.mubr.bf16.mxu0 %v261_v30  ;;  %v2373_v34 = vld [vmem:[#allocation7 + $0x12c] ss:$24 sps:$4 sm:$0xff]  }
 0x115   :  { %v251_v37 = vpop.f32.mrf.mxu1  ;;  %692 = vmatmul.mubr.bf16.vlgmr.msra.gmra.mxu0 %v260_v33 }
 0x116   :  { %v252_v38 = vadd.f32 %v251_v37, %v125_v31  ;;  %2137 = vmatpush3.bf16.msra.mxu0 %v2347_v32  ;;  %v258_v40 = vmax.f32 %v250_v36, 0.0  ;;  %v2365_v32 = vld [vmem:[#allocation7 + $0x158] ss:$24 sps:$4 sm:$0xff]   ;;  %v2379_v36 = vld [vmem:[#allocation7 + $0xfc] ss:$24 sps:$4 sm:$0xff]  }
 0x117   :  { %v253_v41 = vpop.f32.mrf.mxu1  ;;  %2138 = vmatprep.subr.bf16.mxu0 %v2348_v35  ;;  %v2371_v35 = vld [vmem:[#allocation7 + $0x128] ss:$24 sps:$4 sm:$0xff]   ;;  %v2377_v37 = vld [vmem:[#allocation7 + $0xf8] ss:$24 sps:$4 sm:$0xff]  }
 0x118   :  { %v259_v43 = vmax.f32 %v252_v38, 0.0  ;;  %v262_v47 = vpack.c.bf16 %v258_v40, %v258_v40  ;;  %v2385_v38 = vld [vmem:[#allocation7 + $0xcc] ss:$24 sps:$4 sm:$0xff]   ;;  %v2391_v40 = vld [vmem:[#allocation7 + $0x9c] ss:$24 sps:$4 sm:$0xff]  }
 0x119   :  { %v254_v44 = vpop.f32.mrf.mxu1  ;;  %v2389_v41 = vld [vmem:[#allocation7 + $0x98] ss:$24 sps:$4 sm:$0xff]  }
 0x11a   :  { %v263_v45 = vpack.c.bf16 %v259_v43, %v259_v43  ;;  %2139 = vmatpush3.bf16.msra.mxu0 %v2349_v39  ;;  %v2383_v39 = vld [vmem:[#allocation7 + $0xc8] ss:$24 sps:$4 sm:$0xff]   ;;  %v2400_v44 = vld [vmem:[#allocation7 + $0x34] ss:$24 sps:$4 sm:$0xff]  }
 0x11b   :  { %2140 = vmatprep.subr.bf16.mxu0 %v2350_v42  ;;  %v2397_v42 = vld [vmem:[#allocation7 + $0x6c] ss:$24 sps:$4 sm:$0xff]   ;;  %v2395_v43 = vld [vmem:[#allocation7 + $0x68] ss:$24 sps:$4 sm:$0xff]  }
 0x11c   :  { %732 = vmatprep.mubr.bf16.mxu1 %v263_v45  ;;  %v2398_v45 = vld [vmem:[#allocation7 + $0x30] ss:$24 sps:$4 sm:$0xff]  }
 0x11d   :  { %733 = vmatmul.mubr.bf16.vlgmr.msra.gmra.mxu1 %v262_v47  ;;  %v2401_v47 = vld [vmem:[#allocation7 + $0x38] ss:$24 sps:$4 sm:$0xff]  }
 0x11e   :  { %2141 = vmatpush3.bf16.msra.mxu0 %v2351_v46  ;;  %1272 = vmatprep.mubr.bf16.mxu1 %v2611_v0  ;;  %v2403_v46 = vld [vmem:[#allocation7 + $0x3c] ss:$24 sps:$4 sm:$0xff]  }
 0x11f   :  { %2142 = vmatprep.subr.bf16.mxu0 %v2352_v48  ;;  %1241 = vmatpush1.bf16.msra.mxu1 %v2362_v58  ;;  %v2406_v48 = vld [vmem:[#allocation7 + $0x4] ss:$24 sps:$4 sm:$0xff]  }
 0x120   :  { %1242 = vmatprep.subr.bf16.mxu1 %v2370_v61 }
 0x122   :  { %2143 = vmatpush3.bf16.msra.mxu0 %v2353_v49  ;;  %v2404_v49 = vld [vmem:[#allocation7] ss:$24 sps:$4 sm:$0xff]  }
 0x123   :  { %2144 = vmatprep.subr.bf16.mxu0 %v2354_v50  ;;  %1243 = vmatpush1.bf16.msra.mxu1 %v2368_v62  ;;  %v2409_v50 = vld [vmem:[#allocation7 + $0xc] ss:$24 sps:$4 sm:$0xff]   ;;  %v2410_v62 = vld [vmem:[#allocation7 + $0x160] ss:$24 sps:$4 sm:$0xff]  }
 0x124   :  { %1244 = vmatprep.subr.bf16.mxu1 %v2376_v63 }
 0x126   :  { %2145 = vmatpush3.bf16.msra.mxu0 %v2355_v51  ;;  %v2407_v51 = vld [vmem:[#allocation7 + $0x8] ss:$24 sps:$4 sm:$0xff]  }
 0x127   :  { %2146 = vmatprep.subr.bf16.mxu0 %v2356_v52  ;;  %1245 = vmatpush1.bf16.msra.mxu1 %v2374_v1  ;;  %v2412_v52 = vld [vmem:[#allocation7 + $0x164] ss:$24 sps:$4 sm:$0xff]   ;;  %v2415_v1 = vld [vmem:[#allocation7 + $0x134] ss:$24 sps:$4 sm:$0xff]  }
 0x128   :  { %1246 = vmatprep.subr.bf16.mxu1 %v2382_v2  ;;  %v2435_v2 = vld [vmem:[#allocation9 + $0x38] sm:$0xff]  }
 0x12a   :  { %2147 = vmatpush3.bf16.msra.mxu0 %v2357_v53  ;;  %v2434_v53 = vld [vmem:[#allocation9 + $0x78] sm:$0xff]  }
 0x12b   :  { %2148 = vmatprep.subr.bf16.mxu0 %v2358_v54  ;;  %1247 = vmatpush1.bf16.msra.mxu1 %v2380_v3  ;;  %v2438_v3 = vld [vmem:[#allocation9 + $0x70] sm:$0xff]  }
 0x12c   :  { %1248 = vmatprep.subr.bf16.mxu1 %v2388_v4  ;;  %v2413_v4 = vld [vmem:[#allocation7 + $0x130] ss:$24 sps:$4 sm:$0xff]  }
 0x12e   :  { %2149 = vmatpush3.bf16.msra.mxu0 %v2359_v55  ;;  %v2021_v55 = vld [vmem:[%s2760_s6 + $0x6] ss:$0 sm:$0xff] }
 0x12f   :  { %2150 = vmatprep.subr.bf16.mxu0 %v2360_v56  ;;  %1249 = vmatpush1.bf16.msra.mxu1 %v2386_v5  ;;  %v2418_v5 = vld [vmem:[#allocation7 + $0x104] ss:$24 sps:$4 sm:$0xff]  }
 0x130   :  { %1250 = vmatprep.subr.bf16.mxu1 %v2394_v6  ;;  %v2439_v6 = vld [vmem:[#allocation9 + $0x30] sm:$0xff]  }
 0x132   :  { %2151 = vmatpush3.bf16.msra.mxu0 %v2361_v57 }
 0x133   :  { %1281 = vmatprep.subr.bf16.mxu0 %v2367_v60  ;;  %1251 = vmatpush1.bf16.msra.mxu1 %v2392_v7  ;;  %v2442_v7 = vld [vmem:[#allocation9 + $0x68] sm:$0xff]  }
 0x134   :  { %1252 = vmatprep.subr.bf16.mxu1 %v2400_v44  ;;  %v2459_v44 = vld [vmem:[#allocation9 + $0x8] sm:$0xff]  }
 0x137   :  { %1253 = vmatpush1.bf16.msra.mxu1 %v2398_v45  ;;  %v2460_v45 = vld [vmem:[#allocation9 + $0xc8] sm:$0xff]  }
 0x138   :  { %1254 = vmatprep.subr.bf16.mxu1 %v2406_v48  ;;  %v2463_v48 = vld [vmem:[#allocation9] sm:$0xff]  }
 0x13b   :  { %1255 = vmatpush1.bf16.msra.mxu1 %v2404_v49  ;;  %v2464_v49 = vld [vmem:[#allocation9 + $0xc0] sm:$0xff]  }
 0x13c   :  { %1322 = vmatprep.subr.bf16.mxu1 %v2412_v52  ;;  %v98_v52 = vld [vmem:[%s2760_s6 + $0x7] sm:$0x3f] }
 0x1d5   :  { %v693_v9 = vpop.f32.mrf.mxu0 }
 0x1d6   :  { %v694_v19 = vadd.f32 %v693_v9, %v332_v11  ;;  %v2421_v9 = vld [vmem:[#allocation7 + $0xd4] ss:$24 sps:$4 sm:$0xff]   ;;  %v2446_v11 = vld [vmem:[#allocation9 + $0x60] sm:$0xff]  }
 0x1d7   :  { %v695_v10 = vpop.f32.mrf.mxu0 }
 0x1d8   :  { %v696_v22 = vadd.f32 %v695_v10, %v336_v17  ;;  %v2443_v10 = vld [vmem:[#allocation9 + $0x28] sm:$0xff]   ;;  %v2424_v17 = vld [vmem:[#allocation7 + $0xa4] ss:$24 sps:$4 sm:$0xff]  }
 0x1d9   :  { %v697_v15 = vpop.f32.mrf.mxu0 }
 0x1da   :  { %v2419_v15 = vld [vmem:[#allocation7 + $0xd0] ss:$24 sps:$4 sm:$0xff]  }
 0x1db   :  { %v698_v18 = vpop.f32.mrf.mxu0 }
 0x1dc   :  { %v2450_v18 = vld [vmem:[#allocation9 + $0x58] sm:$0xff]  }
 0x1dd   :  { %v734_v20 = vpop.f32.mrf.mxu1 }
 0x1de   :  { %v735_v23 = vadd.f32 %v734_v20, %v694_v19  ;;  %v2422_v19 = vld [vmem:[#allocation7 + $0xa0] ss:$24 sps:$4 sm:$0xff]   ;;  %v2427_v20 = vld [vmem:[#allocation7 + $0x74] ss:$24 sps:$4 sm:$0xff]  }
 0x1df   :  { %v736_v25 = vpop.f32.mrf.mxu1 }
 0x1e0   :  { %v737_v26 = vadd.f32 %v736_v25, %v696_v22  ;;  %v741_v27 = vmax.f32 %v735_v23, 0.0  ;;  %v2451_v22 = vld [vmem:[#allocation9 + $0x18] sm:$0xff]   ;;  %v2454_v23 = vld [vmem:[#allocation9 + $0x50] sm:$0xff]  }
 0x1e1   :  { %v738_v28 = vpop.f32.mrf.mxu1  ;;  %v2425_v25 = vld [vmem:[#allocation7 + $0x70] ss:$24 sps:$4 sm:$0xff]  }
 0x1e2   :  { %v742_v29 = vmax.f32 %v737_v26, 0.0  ;;  %v743_v33 = vpack.c.bf16 %v741_v27, %v741_v27  ;;  %v2430_v26 = vld [vmem:[#allocation7 + $0x44] ss:$24 sps:$4 sm:$0xff]   ;;  %v2455_v27 = vld [vmem:[#allocation9 + $0x10] sm:$0xff]   ;;  %v2428_v28 = vld [vmem:[#allocation7 + $0x40] ss:$24 sps:$4 sm:$0xff]  }
 0x1e3   :  { %v739_v30 = vpop.f32.mrf.mxu1 }
 0x1e4   :  { %v744_v31 = vpack.c.bf16 %v742_v29, %v742_v29  ;;  %v2433_v29 = vld [vmem:[#allocation7 + $0x14] ss:$24 sps:$4 sm:$0xff]   ;;  %v2431_v30 = vld [vmem:[#allocation7 + $0x10] ss:$24 sps:$4 sm:$0xff]  }
 0x1e6   :  { %911 = vmatprep.mubr.bf16.mxu0 %v744_v31  ;;  %v2436_v31 = vld [vmem:[#allocation9 + $0xf8] sm:$0xff]  }
 0x1e7   :  { %912 = vmatmul.mubr.bf16.vlgmr.msra.gmra.mxu0 %v743_v33  ;;  %v2440_v33 = vld [vmem:[#allocation9 + $0xf0] sm:$0xff]  }
 0x1e8   :  { %1282 = vmatpush1.bf16.msra.mxu0 %v2365_v32  ;;  %1313 = vmatprep.mubr.bf16.mxu0 %v2611_v0  ;;  %v2437_v32 = vld [vmem:[#allocation9 + $0xb8] sm:$0xff]  }
 0x1e9   :  { %1283 = vmatprep.subr.bf16.mxu0 %v2373_v34  ;;  %v2441_v34 = vld [vmem:[#allocation9 + $0xb0] sm:$0xff]  }
 0x1ec   :  { %1284 = vmatpush1.bf16.msra.mxu0 %v2371_v35  ;;  %v2444_v35 = vld [vmem:[#allocation9 + $0xe8] sm:$0xff]  }
 0x1ed   :  { %1285 = vmatprep.subr.bf16.mxu0 %v2379_v36  ;;  %v2445_v36 = vld [vmem:[#allocation9 + $0xa8] sm:$0xff]  }
 0x1f0   :  { %1286 = vmatpush1.bf16.msra.mxu0 %v2377_v37  ;;  %v2448_v37 = vld [vmem:[#allocation9 + $0xe0] sm:$0xff]  }
 0x1f1   :  { %1287 = vmatprep.subr.bf16.mxu0 %v2385_v38  ;;  %v2449_v38 = vld [vmem:[#allocation9 + $0xa0] sm:$0xff]  }
 0x1f4   :  { %1288 = vmatpush1.bf16.msra.mxu0 %v2383_v39  ;;  %v2452_v39 = vld [vmem:[#allocation9 + $0xd8] sm:$0xff]  }
 0x1f5   :  { %1289 = vmatprep.subr.bf16.mxu0 %v2391_v40  ;;  %v2453_v40 = vld [vmem:[#allocation9 + $0x98] sm:$0xff]  }
 0x1f8   :  { %1290 = vmatpush1.bf16.msra.mxu0 %v2389_v41  ;;  %v2456_v41 = vld [vmem:[#allocation9 + $0xd0] sm:$0xff]  }
 0x1f9   :  { %1291 = vmatprep.subr.bf16.mxu0 %v2397_v42  ;;  %v2457_v42 = vld [vmem:[#allocation9 + $0x90] sm:$0xff]  }
 0x1fc   :  { %1292 = vmatpush1.bf16.msra.mxu0 %v2395_v43  ;;  %v2458_v43 = vld [vmem:[#allocation9 + $0x48] sm:$0xff]  }
 0x1fd   :  { %1293 = vmatprep.subr.bf16.mxu0 %v2403_v46  ;;  %v2461_v46 = vld [vmem:[#allocation9 + $0x88] sm:$0xff]  }
 0x200   :  { %1294 = vmatpush1.bf16.msra.mxu0 %v2401_v47  ;;  %v2462_v47 = vld [vmem:[#allocation9 + $0x40] sm:$0xff]  }
 0x201   :  { %1295 = vmatprep.subr.bf16.mxu0 %v2409_v50  ;;  %v2465_v50 = vld [vmem:[#allocation9 + $0x80] sm:$0xff]  }
 0x204   :  { %1296 = vmatpush1.bf16.msra.mxu0 %v2407_v51  ;;  %v2466_v51 = vld [vmem:[#allocation9 + $0x178] sm:$0xff]  }
 0x205   :  { %2158 = vmatprep.subr.bf16.mxu0 %v2434_v53  ;;  %v973_v53 = vrot.slane %v98_v52, %v2678_v14 }
 0x2a7   :  { %v2152_v54 = vpop.f32.mrf.mxu0 }
 0x2a9   :  { %v2153_v56 = vpop.f32.mrf.mxu0 }
 0x2aa   :  { %v2154_v57 = vadd.f32 %v2153_v56, %v2152_v54  ;;  %v981_v54 = vrot.slane %v98_v52, %v120_v21  ;;  %v985_v56 = vrot.slane %v98_v52, %v124_v24 }
 0x2ab   :  { %v2155_v58 = vpop.f32.mrf.mxu0 }
 0x2ac   :  { %v914_v59 = vadd.f32 %v2154_v57, %v2021_v55  ;;  %v977_v55 = vrot.slane %v98_v52, %v2684_v16 }
 0x2ad   :  { %v2156_v60 = vpop.f32.mrf.mxu0 }
 0x2ae   :  { %v919_v61 = vmax.f32 %v914_v59, 0.0 }
 0x2b0   :  { %v920_v63 = vpack.c.bf16 %v919_v61, %v919_v61 }
 0x2b2   :  { %1273 = vmatmul.mubr.bf16.vlgmr.msra.gmra.mxu1 %v920_v63  ;;  %1314 = vmatmul.mubr.bf16.vlgmr.msra.gmra.mxu0 %v920_v63 }
 0x2b3   :  { %1323 = vmatpush1.bf16.msra.mxu1 %v2410_v62  ;;  %1354 = vmatprep.mubr.bf16.mxu1 %v2611_v0  ;;  %v2447_v0 = vld [vmem:[#allocation9 + $0x20] sm:$0xff]  }
 0x2b4   :  { %1324 = vmatprep.subr.bf16.mxu1 %v2415_v1  ;;  %2159 = vmatpush3.bf16.msra.mxu0 %v2435_v2 }
 0x2b5   :  { %2160 = vmatprep.subr.bf16.mxu0 %v2438_v3 }
 0x2b7   :  { %1325 = vmatpush1.bf16.msra.mxu1 %v2413_v4 }
 0x2b8   :  { %1326 = vmatprep.subr.bf16.mxu1 %v2418_v5  ;;  %2161 = vmatpush3.bf16.msra.mxu0 %v2439_v6 }
 0x2b9   :  { %2162 = vmatprep.subr.bf16.mxu0 %v2442_v7 }
 0x2bb   :  { %1327 = vmatpush1.bf16.msra.mxu1 %v2416_v8 }
 0x2bc   :  { %1328 = vmatprep.subr.bf16.mxu1 %v2421_v9  ;;  %2163 = vmatpush3.bf16.msra.mxu0 %v2443_v10  ;;  %v2467_v9 = vld [vmem:[#allocation9 + $0x138] sm:$0xff]  }
 0x2bd   :  { %2164 = vmatprep.subr.bf16.mxu0 %v2446_v11  ;;  %v2468_v11 = vld [vmem:[#allocation9 + $0x170] sm:$0xff]  }
 0x2bf   :  { %1329 = vmatpush1.bf16.msra.mxu1 %v2419_v15  ;;  %v2469_v15 = vld [vmem:[#allocation9 + $0x130] sm:$0xff]  }
 0x2c0   :  { %1330 = vmatprep.subr.bf16.mxu1 %v2424_v17  ;;  %2165 = vmatpush3.bf16.msra.mxu0 %v2447_v0  ;;  %v2470_v17 = vld [vmem:[#allocation9 + $0x168] sm:$0xff]  }
 0x2c1   :  { %2166 = vmatprep.subr.bf16.mxu0 %v2450_v18  ;;  %v2471_v0 = vld [vmem:[#allocation9 + $0x128] sm:$0xff]   ;;  %v2472_v18 = vld [vmem:[#allocation9 + $0x160] sm:$0xff]  }
 0x2c3   :  { %1331 = vmatpush1.bf16.msra.mxu1 %v2422_v19  ;;  %v2473_v19 = vld [vmem:[#allocation9 + $0x120] sm:$0xff]  }
 0x2c4   :  { %1332 = vmatprep.subr.bf16.mxu1 %v2427_v20  ;;  %2167 = vmatpush3.bf16.msra.mxu0 %v2451_v22  ;;  %v2474_v20 = vld [vmem:[#allocation9 + $0x158] sm:$0xff]  }
 0x2c5   :  { %2168 = vmatprep.subr.bf16.mxu0 %v2454_v23  ;;  %v2475_v22 = vld [vmem:[#allocation9 + $0x118] sm:$0xff]   ;;  %v2476_v23 = vld [vmem:[#allocation9 + $0x150] sm:$0xff]  }
 0x2c7   :  { %1333 = vmatpush1.bf16.msra.mxu1 %v2425_v25  ;;  %v988_v25 = vsub.s32 4, %v2675_v13 }
 0x2c8   :  { %1334 = vmatprep.subr.bf16.mxu1 %v2430_v26  ;;  %2169 = vmatpush3.bf16.msra.mxu0 %v2455_v27  ;;  %v2477_v26 = vld [vmem:[#allocation9 + $0x110] sm:$0xff]   ;;  %v992_v27 = vsub.s32 5, %v2675_v13 }
 0x2c9   :  { %2170 = vmatprep.subr.bf16.mxu0 %v2458_v43 }
 0x2cb   :  { %1335 = vmatpush1.bf16.msra.mxu1 %v2428_v28  ;;  %v2478_v28 = vld [vmem:[#allocation9 + $0x148] sm:$0xff]  }
 0x2cc   :  { %1336 = vmatprep.subr.bf16.mxu1 %v2433_v29  ;;  %2171 = vmatpush3.bf16.msra.mxu0 %v2459_v44  ;;  %v989_v29 = vrot.slane %v98_v52, %v988_v25 }
 0x2cd   :  { %2172 = vmatprep.subr.bf16.mxu0 %v2462_v47 }
 0x2cf   :  { %1337 = vmatpush1.bf16.msra.mxu1 %v2431_v30  ;;  %v993_v30 = vrot.slane %v98_v52, %v992_v27  ;;  %v2086_v52 = vld [vmem:[%s2760_s6 + $0xd] ss:$0 sm:$0xff] }
 0x2d0   :  { %2180 = vmatprep.subr.bf16.mxu1 %v2436_v31  ;;  %2173 = vmatpush3.bf16.msra.mxu0 %v2463_v48  ;;  %v2479_v31 = vld [vmem:[#allocation9 + $0x108] sm:$0xff]  }
 0x2d1   :  { %2202 = vmatprep.subr.bf16.mxu0 %v2466_v51 }
 0x2d2   :  { %1355 = vmatmul.mubr.bf16.vlgmr.msra.gmra.mxu1 %v920_v63 }
 0x2d3   :  { %2181 = vmatpush3.bf16.msra.mxu1 %v2437_v32 }
 0x2d4   :  { %2182 = vmatprep.subr.bf16.mxu1 %v2440_v33  ;;  %v2480_v33 = vld [vmem:[#allocation9 + $0x140] sm:$0xff]  }
 0x2d7   :  { %2183 = vmatpush3.bf16.msra.mxu1 %v2441_v34 }
 0x2d8   :  { %2184 = vmatprep.subr.bf16.mxu1 %v2444_v35 }
 0x2db   :  { %2185 = vmatpush3.bf16.msra.mxu1 %v2445_v36 }
 0x2dc   :  { %2186 = vmatprep.subr.bf16.mxu1 %v2448_v37  ;;  %v2481_v37 = vld [vmem:[#allocation9 + $0x100] sm:$0xff]  }
 0x2df   :  { %2187 = vmatpush3.bf16.msra.mxu1 %v2449_v38 }
 0x2e0   :  { %2188 = vmatprep.subr.bf16.mxu1 %v2452_v39 }
 0x2e3   :  { %2189 = vmatpush3.bf16.msra.mxu1 %v2453_v40 }
 0x2e4   :  { %2190 = vmatprep.subr.bf16.mxu1 %v2456_v41 }
 0x2e7   :  { %2191 = vmatpush3.bf16.msra.mxu1 %v2457_v42 }
 0x2e8   :  { %2192 = vmatprep.subr.bf16.mxu1 %v2460_v45 }
 0x2eb   :  { %2193 = vmatpush3.bf16.msra.mxu1 %v2461_v46 }
 0x2ec   :  { %2194 = vmatprep.subr.bf16.mxu1 %v2464_v49 }
 0x2ef   :  { %2195 = vmatpush3.bf16.msra.mxu1 %v2465_v50 }
 0x372   :  { %v1274_v57 = vpop.f32.mrf.mxu1  ;;  %v1315_v58 = vpop.f32.mrf.mxu0 }
 0x373   :  { %v1275_v59 = vadd.f32 %v1274_v57, %v973_v53  ;;  %v1316_v60 = vadd.f32 %v1315_v58, %v981_v54  ;;  %v1886_v54 = vand.u32 127, %v110_v12 }
 0x374   :  { %v1276_v61 = vpop.f32.mrf.mxu1  ;;  %v1317_v62 = vpop.f32.mrf.mxu0 }
 0x375   :  { %v1277_v63 = vadd.f32 %v1276_v61, %v977_v55  ;;  %v1318_v1 = vadd.f32 %v1317_v62, %v985_v56  ;;  %v1363_v2 = vmax.f32 %v1275_v59, 0.0  ;;  %v1365_v3 = vmax.f32 %v1316_v60, 0.0 }
 0x376   :  { %v1278_v4 = vpop.f32.mrf.mxu1  ;;  %v1319_v14 = vpop.f32.mrf.mxu0  ;;  %vm1888_vm1 = vcmp.lt.s32.totalorder %v1886_v54, 8  ;;  %vm1893_vm2 = vcmp.ge.s32.totalorder %v1886_v54, 48  ;;  %vm1894_vm3 = vcmp.lt.s32.totalorder %v1886_v54, 58  ;;  %vm1890_vm6 = vcmp.ge.s32.totalorder %v1886_v54, 8 }
 0x377   :  { %v1364_v5 = vmax.f32 %v1277_v63, 0.0  ;;  %v1366_v6 = vmax.f32 %v1318_v1, 0.0  ;;  %v1369_v24 = vpack.c.bf16 %v1363_v2, %v1363_v2  ;;  %v1371_v10 = vpack.c.bf16 %v1365_v3, %v1365_v3  ;;  %vm1895_vm4 = vmand %vm1893_vm2, %vm1894_vm3 }
 0x378   :  { %v1279_v21 = vpop.f32.mrf.mxu1  ;;  %v1320_v7 = vpop.f32.mrf.mxu0  ;;  %vm2722_vm5 = vmor %vm1888_vm1, %vm1895_vm4  ;;  %vm1891_vm7 = vcmp.lt.s32.totalorder %v1886_v54, 48  ;;  %vm1899_vm8 = vcmp.ge.s32.totalorder %v1886_v54, 62  ;;  %vm1900_vm9 = vcmp.lt.s32.totalorder %v1886_v54, 63  ;;  %vm1896_vm11 = vcmp.ge.s32.totalorder %v1886_v54, 58 }
 0x379   :  { %v1370_v16 = vpack.c.bf16 %v1364_v5, %v1364_v5  ;;  %v1372_v8 = vpack.c.bf16 %v1366_v6, %v1366_v6  ;;  %vm1892_vm10 = vmand %vm1890_vm6, %vm1891_vm7  ;;  %vm1897_vm12 = vcmp.lt.s32.totalorder %v1886_v54, 62 }
 0x37a   :  { %vm1901_vm13 = vmand %vm1899_vm8, %vm1900_vm9 }
 0x37b   :  { %1797 = vmatprep.mubr.bf16.mxu0 %v1370_v16  ;;  %1837 = vmatprep.mubr.bf16.mxu1 %v1372_v8  ;;  %vm2730_vm14 = vmand %vm1896_vm11, %vm1897_vm12 }
 0x37c   :  { %1798 = vmatmul.mubr.bf16.vlgmr.msra.gmra.mxu0 %v1369_v24  ;;  %1838 = vmatmul.mubr.bf16.vlgmr.msra.gmra.mxu1 %v1371_v10  ;;  %vm1924_vm15 = vmor %vm1892_vm10, %vm1901_vm13 }
 0x37d   :  { %2203 = vmatpush3.bf16.msra.mxu0 %v2467_v9  ;;  %vm2736_vm0 = vmor %vm1924_vm15, %vm2730_vm14 }
 0x37e   :  { %2204 = vmatprep.subr.bf16.mxu0 %v2468_v11 }
 0x381   :  { %2205 = vmatpush3.bf16.msra.mxu0 %v2469_v15 }
 0x382   :  { %2206 = vmatprep.subr.bf16.mxu0 %v2470_v17 }
 0x385   :  { %2207 = vmatpush3.bf16.msra.mxu0 %v2471_v0 }
 0x386   :  { %2208 = vmatprep.subr.bf16.mxu0 %v2472_v18 }
 0x389   :  { %2209 = vmatpush3.bf16.msra.mxu0 %v2473_v19 }
 0x38a   :  { %2210 = vmatprep.subr.bf16.mxu0 %v2474_v20 }
 0x38d   :  { %2211 = vmatpush3.bf16.msra.mxu0 %v2475_v22 }
 0x38e   :  { %2212 = vmatprep.subr.bf16.mxu0 %v2476_v23 }
 0x391   :  { %2213 = vmatpush3.bf16.msra.mxu0 %v2477_v26 }
 0x392   :  { %v1356_v32 = vpop.f32.mrf.mxu1  ;;  %2214 = vmatprep.subr.bf16.mxu0 %v2478_v28 }
 0x393   :  { %v1357_v34 = vadd.f32 %v1356_v32, %v989_v29 }
 0x394   :  { %v1358_v35 = vpop.f32.mrf.mxu1 }
 0x395   :  { %v1359_v36 = vadd.f32 %v1358_v35, %v993_v30  ;;  %2215 = vmatpush3.bf16.msra.mxu0 %v2479_v31  ;;  %v1367_v38 = vmax.f32 %v1357_v34, 0.0 }
 0x396   :  { %v1360_v39 = vpop.f32.mrf.mxu1  ;;  %2216 = vmatprep.subr.bf16.mxu0 %v2480_v33 }
 0x397   :  { %v1368_v40 = vmax.f32 %v1359_v36, 0.0  ;;  %v1373_v42 = vpack.c.bf16 %v1367_v38, %v1367_v38 }
 0x398   :  { %v1361_v41 = vpop.f32.mrf.mxu1 }
 0x399   :  { %v1374_v13 = vpack.c.bf16 %v1368_v40, %v1368_v40  ;;  %2217 = vmatpush3.bf16.msra.mxu0 %v2481_v37 }
 0x39b   :  { %1877 = vmatprep.mubr.bf16.mxu0 %v1374_v13 }
 0x39c   :  { %1878 = vmatmul.mubr.bf16.vlgmr.msra.gmra.mxu0 %v1373_v42 }
 0x43c   :  { %v2174_v43 = vpop.f32.mrf.mxu0  ;;  %v2196_v44 = vpop.f32.mrf.mxu1 }
 0x43e   :  { %v2175_v45 = vpop.f32.mrf.mxu0  ;;  %v2197_v46 = vpop.f32.mrf.mxu1 }
 0x43f   :  { %v2176_v51 = vadd.f32 %v2175_v45, %v2174_v43  ;;  %v2198_v56 = vadd.f32 %v2197_v46, %v2196_v44 }
 0x440   :  { %v2177_v47 = vpop.f32.mrf.mxu0  ;;  %v2199_v48 = vpop.f32.mrf.mxu1 }
 0x441   :  { %v1800_v53 = vadd.f32 %v2176_v51, %v2086_v52 }
 0x442   :  { %v2178_v49 = vpop.f32.mrf.mxu0  ;;  %v2200_v50 = vpop.f32.mrf.mxu1 }
 0x443   :  { %v1840_v58 = vadd.f32 %v2198_v56, %v1800_v53 }
 0x45c   :  { %v2218_v55 = vpop.f32.mrf.mxu0 }
 0x45e   :  { %v2219_v57 = vpop.f32.mrf.mxu0 }
 0x45f   :  { %v2220_v59 = vadd.f32 %v2219_v57, %v2218_v55 }
 0x460   :  { %v2221_v60 = vpop.f32.mrf.mxu0 }
 0x461   :  { %v1880_v61 = vadd.f32 %v2220_v59, %v1840_v58 }
 0x462   :  { %v2222_v62 = vpop.f32.mrf.mxu0 }
 0x463   :  { %v1903_v63 = vsel %vm1888_vm1, %v1880_v61, -1e+30  ;;  %v1906_v1 = vsel %vm1895_vm4, %v1880_v61, -1e+30  ;;  %v1926_v9 = vmul.f32 2.0, %v1880_v61 }
 0x464   :  { %1904 = vmax.xlane.f32.xlu0 %v1903_v63 }
 0x465   :  { %v1927_v10 = vsel %vm2730_vm14, %v1926_v9, %v1880_v61 }
 0x466   :  { %v1928_v11 = vsel %vm2736_vm0, %v1927_v10, 0.0 }
 0x467   :  { %v1929_v15 = vsub.f32 0.0, %v1928_v11 }
 0x468   :  { %1907 = vmax.xlane.f32.xlu0 %v1906_v1 }
 0x469   :  { %v1930_v17 = vmul.f32 1.442695, %v1929_v15 }
 0x4ed   :  { %v1905_v2 = vpop.xlane.xlu0 %1904 }
 0x4f1   :  { %v1908_v3 = vpop.xlane.xlu0 %1907 }
 0x4f2   :  { %v1909_v4 = vsel %vm1888_vm1, %v1905_v2, %v1908_v3 }
 0x4f3   :  { %v1910_v14 = vsub.f32 %v1880_v61, %v1909_v4 }
 0x4f5   :  { %v1911_v5 = vsel %vm2722_vm5, %v1910_v14, 0.0 }
 0x4f6   :  { %v1912_v6 = vmul.f32 1.442695, %v1911_v5 }
 0x4f8   :  { %2482 = vpow2.f32 %v1912_v6 }
 0x4f9   :  { %2484 = vpow2.f32 %v1930_v17 }
 0x505   :  { %v2483_v21 = vpop.eup %2482 }
 0x506   :  { %v1914_v7 = vsel %vm1888_vm1, %v2483_v21, 0.0  ;;  %v1917_v16 = vsel %vm1895_vm4, %v2483_v21, 0.0  ;;  %v2485_v0 = vpop.eup %2484 }
 0x507   :  { %1915 = vadd.xlane.f32.xlu1 %v1914_v7  ;;  %v1932_v18 = vadd.f32 1.0, %v2485_v0 }
 0x509   :  { %2486 = vrcp.f32 %v1932_v18 }
 0x50b   :  { %1918 = vadd.xlane.f32.xlu1 %v1917_v16 }
 0x516   :  { %v2487_v22 = vpop.eup %2486 }
 0x517   :  { %v1934_v23 = vmul.f32 2.0, %v2487_v22 }
 0x519   :  { %v2135_v25 = vadd.f32 -1.0, %v1934_v23 }
 0x51b   :  { %v1936_v28 = vsel %vm2730_vm14, %v2135_v25, %v2487_v22 }
 0x51c   :  { %v1937_v31 = vsel %vm2736_vm0, %v1936_v28, %v1880_v61 }
 0x590   :  { %v1916_v19 = vpop.xlane.xlu1 %1915 }
 0x591   :  { %2488 = vrcp.f32 %v1916_v19 }
 0x594   :  { %v1919_v20 = vpop.xlane.xlu1 %1918 }
 0x595   :  { %2490 = vrcp.f32 %v1919_v20 }
 0x59e   :  { %v2489_v26 = vpop.eup %2488 }
 0x5a2   :  { %v2491_v27 = vpop.eup %2490 }
 0x5a3   :  { %v1922_v29 = vsel %vm1888_vm1, %v2489_v26, %v2491_v27 }
 0x5a4   :  { %v1923_v30 = vmul.f32 %v2483_v21, %v1922_v29 }
 0x5a6   :  { %v1938_v32 = vsel %vm2722_vm5, %v1923_v30, %v1937_v31 }
 0x5a7   :  { %1939 = vst [vmem:[%s2761_s7] sm:$0xff] %v1938_v32 }
 0x5a8   :  { %1944 = vsyncpa [#allocation3], 1 }
 0x5a9   :  { %1945 = vsyncpa [#allocation5], 1 }
 0x5aa   :  { %1946 = vsyncpa [#allocation8], 1 }

</bundles_post_ra>
